<compile_context>
chip_gen: v7x
topology: tpu7x:2x2x1
jax: 0.10.0
libtpu: 0.0.40
codegen_flags: <defaults>
</compile_context>

<pallas_src>
import jax
import jax.numpy as jnp
from jax.experimental import pallas as pl
from jax.experimental.pallas import tpu as pltpu

H1, H2, OUT = 128, 256, 3


def _critic_kernel(s_ref, w1_ref, b1_ref, w2_ref, b2_ref, w3_ref, b3_ref, o_ref):
    x = s_ref[...]
    if x.dtype != w1_ref.dtype:           # static (trace-time) check
        x = x.astype(w1_ref.dtype)        # in-VMEM cast only; no extra HBM traffic
    # Layer 1: Linear(state_size -> 128) + ReLU  (MXU matmul, f32 accumulate)
    h1 = jnp.dot(x, w1_ref[...], preferred_element_type=jnp.float32)
    h1 = jnp.maximum(h1 + b1_ref[...], 0.0)          # bias + ReLU stay f32 (VPU)
    # Layer 2: Linear(128 -> 256) + ReLU
    h2 = jnp.dot(h1.astype(w2_ref.dtype), w2_ref[...],
                 preferred_element_type=jnp.float32)
    h2 = jnp.maximum(h2 + b2_ref[...], 0.0)
    # Layer 3: Linear(256 -> 3).  K=256/N=3 is negligible MXU time, so w3/b3
    # stay f32 and h2 is used directly (no (tile_b, 256) cast / extra temp).
    v = jnp.dot(h2, w3_ref[...], preferred_element_type=jnp.float32)
    o_ref[...] = (v + b3_ref[...]).astype(o_ref.dtype)


def _round_up(x, m):
    return (x + m - 1) // m * m


def _vmem_capacity_bytes():
    try:
        return int(pltpu.get_tpu_info().vmem_capacity_bytes)
    except Exception:
        return 64 * 2 ** 20    # conservative fallback: v7x per-TensorCore VMEM


def _footprint_bytes(tile_b, state_size, in_item):
    return (
        2 * tile_b * state_size * in_item              # double-buffered state tile
        + 2 * tile_b * OUT * 4                         # double-buffered output tile
        + 2 * (state_size * H1 + H1 * H2) * in_item    # resident w1/w2 (default 2 bufs)
        + 2 * (H2 * OUT) * 4                           # resident w3 (always f32)
        + 2 * (H1 + H2 + OUT) * 4                      # resident biases (always f32)
        + tile_b * (H1 + H2) * 4                       # f32 h1/h2 temporaries
    )


def prepare_params(params, compute_dtype=jnp.float32):
    """One-time (hoisted) cast of the matmul-heavy weights.

    Only w1/w2 are cast; w3 and all biases stay f32 (layer 3 is tiny and the
    elementwise path inside the kernel is kept in f32 for v5e)."""
    cdt = jnp.dtype(compute_dtype)
    out = dict(params)
    out["w1"] = params["w1"].astype(cdt)
    out["w2"] = params["w2"].astype(cdt)
    return out


def critic_forward(state, params, *, tile_b=None):
    """state: (B, state_size); params: dict w1,b1,w2,b2,w3,b3 (w stored (in,out)).

    Pass params through `prepare_params(..., jnp.bfloat16)` once (outside any
    step loop) to run the w1/w2 matmuls in bf16 with f32 accumulation."""
    B, state_size = state.shape
    in_item = jnp.dtype(params["w1"].dtype).itemsize

    vmem_cap = _vmem_capacity_bytes()
    budget = int(0.6 * vmem_cap)

    if tile_b is None:
        # Big tiles amortize the ~0.35 us/step grid overhead, but:
        #  (a) cap at ceil(B/2) so the grid has >= 2 steps whenever B > 8
        #      (lets v7x shard the "parallel" batch axis across both TCs),
        #  (b) keep the footprint within ~60% of the per-core VMEM.
        max_useful = _round_up(-(-B // 2), 8) if B > 8 else 8
        tile_b = min(2048, max_useful)
        while tile_b > 8 and _footprint_bytes(tile_b, state_size, in_item) > budget:
            tile_b //= 2
    tile_b = max(8, _round_up(tile_b, 8))

    # No wrapper-side padding: Pallas masks the partial last block on writeback
    # and each output row depends only on its own input row.
    grid = (pl.cdiv(B, tile_b),)

    est = _footprint_bytes(tile_b, state_size, in_item)
    vmem_limit_bytes = int(min(max(2 * est, 16 * 2 ** 20), int(0.9 * vmem_cap)))

    flops = 2 * B * (state_size * H1 + H1 * H2 + H2 * OUT)
    bytes_accessed = (
        B * state_size * jnp.dtype(state.dtype).itemsize
        + (state_size * H1 + H1 * H2) * in_item
        + (H2 * OUT + H1 + H2 + OUT) * 4
        + B * OUT * 4
    )

    resident = lambda shape: pl.BlockSpec(shape, lambda i: (0, 0))

    out = pl.pallas_call(
        _critic_kernel,
        out_shape=jax.ShapeDtypeStruct((B, OUT), jnp.float32),
        grid=grid,
        in_specs=[
            pl.BlockSpec((tile_b, state_size), lambda i: (i, 0)),   # state tile
            resident((state_size, H1)),
            resident((1, H1)),
            resident((H1, H2)),
            resident((1, H2)),
            resident((H2, OUT)),
            resident((1, OUT)),
        ],
        out_specs=pl.BlockSpec((tile_b, OUT), lambda i: (i, 0)),
        compiler_params=pltpu.CompilerParams(
            dimension_semantics=("parallel",),      # megacore sharding on v7x
            vmem_limit_bytes=vmem_limit_bytes,
        ),
        cost_estimate=pl.CostEstimate(
            flops=flops, transcendentals=0, bytes_accessed=bytes_accessed),
    )(state, params["w1"], params["b1"], params["w2"], params["b2"],
      params["w3"], params["b3"])

    return out


def init_params(key, state_size):
    """Deterministic init mirroring nn.Linear's U(-1/sqrt(fan_in), +1/sqrt(fan_in))."""
    sizes = [(state_size, H1), (H1, H2), (H2, OUT)]
    params = {}
    for i, (fin, fout) in enumerate(sizes, start=1):
        key, kw, kb = jax.random.split(key, 3)
        bound = 1.0 / (fin ** 0.5)
        # weights stored as (in, out) = transpose of PyTorch's (out, in)
        params[f"w{i}"] = jax.random.uniform(
            kw, (fin, fout), jnp.float32, minval=-bound, maxval=bound)
        # biases kept 2D (1, out) for TPU-friendly broadcasting inside the kernel
        params[f"b{i}"] = jax.random.uniform(
            kb, (1, fout), jnp.float32, minval=-bound, maxval=bound)
    return params


def reference_forward(state, params):
    h1 = jnp.maximum(state @ params["w1"] + params["b1"], 0.0)
    h2 = jnp.maximum(h1 @ params["w2"] + params["b2"], 0.0)
    return h2 @ params["w3"] + params["b3"]


if __name__ == "__main__":
    key = jax.random.PRNGKey(0)
    state_size = 32     # small synthetic state dimension
    batch = 8

    k_params, k_state, k_state2 = jax.random.split(key, 3)
    params = init_params(k_params, state_size)
    state = jax.random.normal(k_state, (batch, state_size), jnp.float32)

    # f32 path (default): exact match against the pure-JAX reference.
    value = critic_forward(state, params)
    jax.block_until_ready(value)
    ref = reference_forward(state, params)
    assert value.shape == (batch, OUT)
    assert jnp.allclose(value, ref, atol=1e-5, rtol=1e-5)

    # Multi-step grid with a partial (masked) last block: B=20, tile_b=8 -> 3 steps.
    state2 = jax.random.normal(k_state2, (20, state_size), jnp.float32)
    value2 = critic_forward(state2, params, tile_b=8)
    jax.block_until_ready(value2)
    ref2 = reference_forward(state2, params)
    assert value2.shape == (20, OUT)
    assert jnp.allclose(value2, ref2, atol=1e-5, rtol=1e-5)

    # Same B=20 with automatic tile selection (ceil(B/2) -> >=2 grid steps).
    value2b = critic_forward(state2, params)
    jax.block_until_ready(value2b)
    assert jnp.allclose(value2b, ref2, atol=1e-5, rtol=1e-5)

    # bf16 path: weights cast ONCE outside the forward; state cast in-kernel,
    # matmuls accumulate in f32, so only a small numerics delta vs. f32 ref.
    params_bf16 = prepare_params(params, jnp.bfloat16)
    value_bf16 = critic_forward(state, params_bf16)
    jax.block_until_ready(value_bf16)
    assert value_bf16.shape == (batch, OUT)
    assert jnp.allclose(value_bf16, ref, atol=5e-2, rtol=5e-2)

    print("KERNEL_OK")
</pallas_src>

<mosaic_0001>
module attributes {stable_mosaic.version = 11 : i64} {
  func.func @_critic_kernel(%arg0: i32, %arg1: memref<8x32xf32, #tpu.memory_space<vmem>>, %arg2: memref<32x128xf32, #tpu.memory_space<vmem>>, %arg3: memref<1x128xf32, #tpu.memory_space<vmem>>, %arg4: memref<128x256xf32, #tpu.memory_space<vmem>>, %arg5: memref<1x256xf32, #tpu.memory_space<vmem>>, %arg6: memref<256x3xf32, #tpu.memory_space<vmem>>, %arg7: memref<1x3xf32, #tpu.memory_space<vmem>>, %arg8: memref<8x3xf32, #tpu.memory_space<vmem>>) attributes {dimension_semantics = [#tpu.dimension_semantics<parallel>], iteration_bounds = array<i64: 1>, scalar_prefetch = 0 : i64, scratch_operands = 0 : i64, tpu.core_type = #tpu.core_type<tc>, window_params = [{transform_indices = @transform_0, window_bounds = array<i64: 8, 32>}, {pipeline_mode = #tpu.pipeline_mode<synchronous>, transform_indices = @transform_1, window_bounds = array<i64: 32, 128>}, {pipeline_mode = #tpu.pipeline_mode<synchronous>, transform_indices = @transform_2, window_bounds = array<i64: 1, 128>}, {pipeline_mode = #tpu.pipeline_mode<synchronous>, transform_indices = @transform_3, window_bounds = array<i64: 128, 256>}, {pipeline_mode = #tpu.pipeline_mode<synchronous>, transform_indices = @transform_4, window_bounds = array<i64: 1, 256>}, {pipeline_mode = #tpu.pipeline_mode<synchronous>, transform_indices = @transform_5, window_bounds = array<i64: 256, 3>}, {pipeline_mode = #tpu.pipeline_mode<synchronous>, transform_indices = @transform_6, window_bounds = array<i64: 1, 3>}, {transform_indices = @transform_7, window_bounds = array<i64: 8, 3>}]} {
    %c0 = arith.constant 0 : index
    %c0_0 = arith.constant 0 : index
    %0 = vector.load %arg1[%c0, %c0_0] : memref<8x32xf32, #tpu.memory_space<vmem>>, vector<8x32xf32>
    %c0_1 = arith.constant 0 : index
    %c0_2 = arith.constant 0 : index
    %1 = vector.load %arg2[%c0_1, %c0_2] : memref<32x128xf32, #tpu.memory_space<vmem>>, vector<32x128xf32>
    %cst = arith.constant dense<0.000000e+00> : vector<8x128xf32>
    %2 = tpu.matmul %0, %1, %cst {dimension_numbers = #tpu.dot_dimension_numbers<[1], [0], [0], [1], [0, 0, 1, 1], [], []>} : vector<8x32xf32>, vector<32x128xf32>, vector<8x128xf32> -> vector<8x128xf32>
    %c0_3 = arith.constant 0 : index
    %c0_4 = arith.constant 0 : index
    %3 = vector.load %arg3[%c0_3, %c0_4] : memref<1x128xf32, #tpu.memory_space<vmem>>, vector<1x128xf32>
    %4 = vector.broadcast %3 : vector<1x128xf32> to vector<8x128xf32>
    %5 = arith.addf %2, %4 : vector<8x128xf32>
    %cst_5 = arith.constant 0.000000e+00 : f32
    %6 = vector.broadcast %cst_5 : f32 to vector<8x128xf32>
    %7 = arith.maximumf %5, %6 : vector<8x128xf32>
    %c0_6 = arith.constant 0 : index
    %c0_7 = arith.constant 0 : index
    %8 = vector.load %arg4[%c0_6, %c0_7] : memref<128x256xf32, #tpu.memory_space<vmem>>, vector<128x256xf32>
    %cst_8 = arith.constant dense<0.000000e+00> : vector<8x256xf32>
    %9 = tpu.matmul %7, %8, %cst_8 {dimension_numbers = #tpu.dot_dimension_numbers<[1], [0], [0], [1], [0, 0, 1, 1], [], []>} : vector<8x128xf32>, vector<128x256xf32>, vector<8x256xf32> -> vector<8x256xf32>
    %c0_9 = arith.constant 0 : index
    %c0_10 = arith.constant 0 : index
    %10 = vector.load %arg5[%c0_9, %c0_10] : memref<1x256xf32, #tpu.memory_space<vmem>>, vector<1x256xf32>
    %11 = vector.broadcast %10 : vector<1x256xf32> to vector<8x256xf32>
    %12 = arith.addf %9, %11 : vector<8x256xf32>
    %cst_11 = arith.constant 0.000000e+00 : f32
    %13 = vector.broadcast %cst_11 : f32 to vector<8x256xf32>
    %14 = arith.maximumf %12, %13 : vector<8x256xf32>
    %c0_12 = arith.constant 0 : index
    %c0_13 = arith.constant 0 : index
    %15 = vector.load %arg6[%c0_12, %c0_13] : memref<256x3xf32, #tpu.memory_space<vmem>>, vector<256x3xf32>
    %cst_14 = arith.constant dense<0.000000e+00> : vector<8x3xf32>
    %16 = tpu.matmul %14, %15, %cst_14 {dimension_numbers = #tpu.dot_dimension_numbers<[1], [0], [0], [1], [0, 0, 1, 1], [], []>} : vector<8x256xf32>, vector<256x3xf32>, vector<8x3xf32> -> vector<8x3xf32>
    %c0_15 = arith.constant 0 : index
    %c0_16 = arith.constant 0 : index
    %17 = vector.load %arg7[%c0_15, %c0_16] : memref<1x3xf32, #tpu.memory_space<vmem>>, vector<1x3xf32>
    %18 = vector.broadcast %17 : vector<1x3xf32> to vector<8x3xf32>
    %19 = arith.addf %16, %18 : vector<8x3xf32>
    %c0_17 = arith.constant 0 : index
    %c0_18 = arith.constant 0 : index
    %20 = vector.load %arg8[%c0_17, %c0_18] : memref<8x3xf32, #tpu.memory_space<vmem>>, vector<8x3xf32>
    tpu.vector_store %arg8[%c0_17, %c0_18], %19 {strides = array<i32>} : memref<8x3xf32, #tpu.memory_space<vmem>>, vector<8x3xf32>,
    return
  }
  func.func @transform_0(%arg0: i32) -> (i32, i32) {
    %c0_i32 = arith.constant 0 : i32
    %c0_i32_0 = arith.constant 0 : i32
    return %arg0, %c0_i32 : i32, i32
  }
  func.func @transform_1(%arg0: i32) -> (i32, i32) {
    %c0_i32 = arith.constant 0 : i32
    %c0_i32_0 = arith.constant 0 : i32
    %c0_i32_1 = arith.constant 0 : i32
    return %c0_i32, %c0_i32_0 : i32, i32
  }
  func.func @transform_2(%arg0: i32) -> (i32, i32) {
    %c0_i32 = arith.constant 0 : i32
    %c0_i32_0 = arith.constant 0 : i32
    %c0_i32_1 = arith.constant 0 : i32
    return %c0_i32, %c0_i32_0 : i32, i32
  }
  func.func @transform_3(%arg0: i32) -> (i32, i32) {
    %c0_i32 = arith.constant 0 : i32
    %c0_i32_0 = arith.constant 0 : i32
    %c0_i32_1 = arith.constant 0 : i32
    return %c0_i32, %c0_i32_0 : i32, i32
  }
  func.func @transform_4(%arg0: i32) -> (i32, i32) {
    %c0_i32 = arith.constant 0 : i32
    %c0_i32_0 = arith.constant 0 : i32
    %c0_i32_1 = arith.constant 0 : i32
    return %c0_i32, %c0_i32_0 : i32, i32
  }
  func.func @transform_5(%arg0: i32) -> (i32, i32) {
    %c0_i32 = arith.constant 0 : i32
    %c0_i32_0 = arith.constant 0 : i32
    %c0_i32_1 = arith.constant 0 : i32
    return %c0_i32, %c0_i32_0 : i32, i32
  }
  func.func @transform_6(%arg0: i32) -> (i32, i32) {
    %c0_i32 = arith.constant 0 : i32
    %c0_i32_0 = arith.constant 0 : i32
    %c0_i32_1 = arith.constant 0 : i32
    return %c0_i32, %c0_i32_0 : i32, i32
  }
  func.func @transform_7(%arg0: i32) -> (i32, i32) {
    %c0_i32 = arith.constant 0 : i32
    %c0_i32_0 = arith.constant 0 : i32
    return %arg0, %c0_i32 : i32, i32
  }
}

</mosaic_0001>

<bundles_post_ra>
// kernel: tpu_custom_call.1
= control target key start
LH: loop header
LB: loop body
LE: loop exit
PB: predicated region body
PF: predicated region fallthrough
CT: control target
= control target key end

     0   :  { %12 = vsyncpa [#allocation3], 0  ;;  %s514_s24 = smov [#allocation2]   ;;  %s779_s0 = inlined_call_operand.vmem [shape: f32[8,32], index: 0, kind: input, shape index: {}]   ;;  %s780_s1 = inlined_call_operand.hbm [shape: f32[32,128], index: 1, kind: input, shape index: {}]   ;;  %s781_s2 = inlined_call_operand.vmem [shape: f32[1,128], index: 2, kind: input, shape index: {}]   ;;  %s782_s3 = inlined_call_operand.vmem [shape: f32[128,256], index: 3, kind: input, shape index: {}]   ;;  %s783_s4 = inlined_call_operand.vmem [shape: f32[1,256], index: 4, kind: input, shape index: {}]   ;;  %s784_s5 = inlined_call_operand.vmem [shape: f32[256,3], index: 5, kind: input, shape index: {}]   ;;  %s785_s6 = inlined_call_operand.vmem [shape: f32[1,3], index: 6, kind: input, shape index: {}]   ;;  %s786_s7 = inlined_call_operand.vmem [shape: f32[8,3], index: 7, kind: output, shape index: {}]  }
   0x1   :  { %s20_s25 = sshll.u32 %s514_s24, 4  ;;  %s490_s28 = scalar_lea.hbm %s780_s1, 512  ;;  %s21_s25 = int_to_ptr.vmem [resolvable:$true] %s20_s25 }
   0x2   :  { %p491_p0 = scmp.ne.s32.totalorder %s780_s1, %s490_s28  ;;  %p494_p1 = scmp.lt.u32.totalorder %s490_s28, %s780_s1 }
   0x4   :  { %p496_p2 = pnand %p494_p1, %p491_p0 }
   0x6   :  { %499 = shalt.err (!%p496_p2)
}
   0x7   :  { %s500_s10 = scalar_lea.vmem %s21_s25, 512  ;;  %p505_p4 = scmp.lt.s32.totalorder %s21_s25, %s21_s25 }
   0x8   :  { %p501_p3 = scmp.ne.s32.totalorder %s21_s25, %s500_s10  ;;  %p506_p5 = scmp.lt.s32.totalorder %s500_s10, %s500_s10 }
   0xa   :  { %p507_p6 = por %p506_p5, %p505_p4 }
   0xc   :  { %p508_p7 = pnand %p507_p6, %p501_p3 }
   0xe   :  { %511 = shalt.err (!%p508_p7)
}
   0xf   :  { %s515_s11 = smov 128   ;;  %s516_s12 = smov 8  }
  0x10   :  { %26 = dma.hbm_to_vmem [thread:$0]  %s780_s1, 512, %s21_s25, [#allocation3], %s515_s11, %s515_s11, %s516_s12  }
  0x11   :  { %512 = dma.done.wait [#allocation3], 512  }
  0x12   :  { %513 = vsyncadd [#allocation3], 4294966784  ;;  %v517_v0 = vmov 0.0|0.0   ;;  %vm518_vm0 = vmmov 0   ;;  %v519_v1 = vmov 0.0   ;;  %v41_v2 = vld [vmem:[#allocation2] sm:$0xff] }
  0x13   :  { %414 = vmatprep.subr.bf16.mxu0 %v517_v0  ;;  %411 = vmatprep.mubr.msk.f32.mxu0 %vm518_vm0, %v519_v1  ;;  %v42_v3 = vld [vmem:[#allocation2 + $0x8] sm:$0xff]  ;;  %v43_v4 = vld [vmem:[#allocation2 + $0x10] sm:$0xff]  ;;  %v44_v6 = vld [vmem:[#allocation2 + $0x18] sm:$0xff]  ;;  %vm52_vm1 = vcmask 261120   ;;  %vm353_vm2 = vcmask 23552  }
  0x14   :  { %235 = vmatprep.mubr.f32.mxu1 %v519_v1  ;;  %v415_v5 = vpack.c.bf16 %v42_v3, %v41_v2  ;;  %v128_v7 = vld [vmem:[%s782_s3 + $0x8] sm:$0xff]  ;;  %v130_v8 = vld [vmem:[%s782_s3 + $0x18] sm:$0xff]  ;;  %v127_v9 = vld [vmem:[%s782_s3] sm:$0xff]  ;;  %v418_v11 = vpack.c.bf16 %v44_v6, %v43_v4 }
  0x15   :  { %v129_v10 = vld [vmem:[%s782_s3 + $0x10] sm:$0xff]  ;;  %v420_v12 = vpack.c.bf16 %v130_v8, %v128_v7  ;;  %v132_v14 = vld [vmem:[%s782_s3 + $0x28] sm:$0xff]  ;;  %v134_v15 = vld [vmem:[%s782_s3 + $0x38] sm:$0xff] }
  0x16   :  { %416 = vmatpush3.bf16.msra.mxu0 %v415_v5  ;;  %v422_v13 = vpack.c.bf16 %v129_v10, %v127_v9  ;;  %v131_v16 = vld [vmem:[%s782_s3 + $0x20] sm:$0xff]  ;;  %v424_v17 = vpack.c.bf16 %v134_v15, %v132_v14  ;;  %v133_v18 = vld [vmem:[%s782_s3 + $0x30] sm:$0xff]  ;;  %v136_v19 = vld [vmem:[%s782_s3 + $0x48] sm:$0xff] }
  0x17   :  { %417 = vmatprep.subr.bf16.mxu0 %v517_v0  ;;  %v138_v20 = vld [vmem:[%s782_s3 + $0x58] sm:$0xff]  ;;  %421 = vmatprep.subr.bf16.mxu1 %v420_v12  ;;  %v426_v21 = vpack.c.bf16 %v133_v18, %v131_v16  ;;  %v40_v22 = vld [vmem:[%s779_s0] sm:$0xff]  ;;  %v137_v25 = vld [vmem:[%s782_s3 + $0x50] sm:$0xff] }
  0x18   :  { %423 = vmatpush1.bf16.msra.mxu1 %v422_v13  ;;  %v428_v23 = vpack.c.bf16 %v138_v20, %v136_v19  ;;  %v135_v24 = vld [vmem:[%s782_s3 + $0x40] sm:$0xff]  ;;  %v140_v26 = vld [vmem:[%s782_s3 + $0x68] sm:$0xff]  ;;  %v142_v27 = vld [vmem:[%s782_s3 + $0x78] sm:$0xff] }
  0x19   :  { %425 = vmatprep.subr.bf16.mxu1 %v424_v17  ;;  %v430_v28 = vpack.c.bf16 %v137_v25, %v135_v24  ;;  %v432_v29 = vpack.c.bf16 %v142_v27, %v140_v26  ;;  %v139_v30 = vld [vmem:[%s782_s3 + $0x60] sm:$0xff]  ;;  %v141_v31 = vld [vmem:[%s782_s3 + $0x70] sm:$0xff]  ;;  %v144_v32 = vld [vmem:[%s782_s3 + $0x88] sm:$0xff] }
  0x1a   :  { %419 = vmatpush3.bf16.msra.mxu0 %v418_v11  ;;  %v146_v33 = vld [vmem:[%s782_s3 + $0x98] sm:$0xff]  ;;  %v434_v34 = vpack.c.bf16 %v141_v31, %v139_v30  ;;  %v143_v36 = vld [vmem:[%s782_s3 + $0x80] sm:$0xff]  ;;  %v145_v37 = vld [vmem:[%s782_s3 + $0x90] sm:$0xff] }
  0x1b   :  { %v436_v35 = vpack.c.bf16 %v146_v33, %v144_v32  ;;  %v148_v38 = vld [vmem:[%s782_s3 + $0xa8] sm:$0xff]  ;;  %v150_v39 = vld [vmem:[%s782_s3 + $0xb8] sm:$0xff]  ;;  %v438_v40 = vpack.c.bf16 %v145_v37, %v143_v36  ;;  %v147_v42 = vld [vmem:[%s782_s3 + $0xa0] sm:$0xff] }
  0x1c   :  { %427 = vmatpush1.bf16.msra.mxu1 %v426_v21  ;;  %v440_v41 = vpack.c.bf16 %v150_v39, %v148_v38  ;;  %v149_v43 = vld [vmem:[%s782_s3 + $0xb0] sm:$0xff]  ;;  %v152_v44 = vld [vmem:[%s782_s3 + $0xc8] sm:$0xff]  ;;  %v154_v45 = vld [vmem:[%s782_s3 + $0xd8] sm:$0xff] }
  0x1d   :  { %412 = vmatmul.mubr.msk.f32.vlgmr.msra.gmra.mrb[0].mxu0 %vm52_vm1, %v40_v22  ;;  %429 = vmatprep.subr.bf16.mxu1 %v428_v23  ;;  %v442_v46 = vpack.c.bf16 %v149_v43, %v147_v42  ;;  %v444_v47 = vpack.c.bf16 %v154_v45, %v152_v44  ;;  %v151_v48 = vld [vmem:[%s782_s3 + $0xc0] sm:$0xff]  ;;  %v153_v49 = vld [vmem:[%s782_s3 + $0xd0] sm:$0xff]  ;;  %v156_v51 = vld [vmem:[%s782_s3 + $0xe8] sm:$0xff] }
  0x1e   :  { %v446_v50 = vpack.c.bf16 %v153_v49, %v151_v48  ;;  %v158_v52 = vld [vmem:[%s782_s3 + $0xf8] sm:$0xff]  ;;  %v155_v54 = vld [vmem:[%s782_s3 + $0xe0] sm:$0xff]  ;;  %v157_v55 = vld [vmem:[%s782_s3 + $0xf0] sm:$0xff] }
  0x1f   :  { %v448_v53 = vpack.c.bf16 %v158_v52, %v156_v51  ;;  %v450_v56 = vpack.c.bf16 %v157_v55, %v155_v54  ;;  %v260_v57 = vld [vmem:[%s784_s5 + $0x80] sm:$0xff]  ;;  %v261_v58 = vld [vmem:[%s784_s5 + $0x88] sm:$0xff]  ;;  %v262_v62 = vld [vmem:[%s784_s5 + $0x90] sm:$0xff] }
  0x20   :  { %431 = vmatpush1.bf16.msra.mxu1 %v430_v28  ;;  %v244_v59 = vld [vmem:[%s784_s5] sm:$0xff]  ;;  %v452_v60 = vpack.c.bf16 %v261_v58, %v260_v57  ;;  %v245_v61 = vld [vmem:[%s784_s5 + $0x8] sm:$0xff]  ;;  %v263_v63 = vld [vmem:[%s784_s5 + $0x98] sm:$0xff] }
  0x21   :  { %433 = vmatprep.subr.bf16.mxu1 %v432_v29  ;;  %v454_v0 = vpack.c.bf16 %v245_v61, %v244_v59  ;;  %v456_v1 = vpack.c.bf16 %v263_v63, %v262_v62  ;;  %v246_v2 = vld [vmem:[%s784_s5 + $0x10] sm:$0xff]  ;;  %v247_v3 = vld [vmem:[%s784_s5 + $0x18] sm:$0xff]  ;;  %v264_v4 = vld [vmem:[%s784_s5 + $0xa0] sm:$0xff] }
  0x22   :  { %453 = vmatprep.subr.bf16.mxu0 %v452_v60  ;;  %v265_v5 = vld [vmem:[%s784_s5 + $0xa8] sm:$0xff]  ;;  %v458_v6 = vpack.c.bf16 %v247_v3, %v246_v2  ;;  %v248_v8 = vld [vmem:[%s784_s5 + $0x20] sm:$0xff]  ;;  %v266_v10 = vld [vmem:[%s784_s5 + $0xb0] sm:$0xff] }
  0x23   :  { %455 = vmatpush3.bf16.msra.mxu0 %v454_v0  ;;  %v460_v7 = vpack.c.bf16 %v265_v5, %v264_v4  ;;  %v249_v9 = vld [vmem:[%s784_s5 + $0x28] sm:$0xff]  ;;  %v267_v11 = vld [vmem:[%s784_s5 + $0xb8] sm:$0xff]  ;;  %v250_v14 = vld [vmem:[%s784_s5 + $0x30] sm:$0xff] }
  0x24   :  { %435 = vmatpush1.bf16.msra.mxu1 %v434_v34  ;;  %457 = vmatprep.subr.bf16.mxu0 %v456_v1  ;;  %v462_v12 = vpack.c.bf16 %v249_v9, %v248_v8  ;;  %v464_v13 = vpack.c.bf16 %v267_v11, %v266_v10  ;;  %v251_v15 = vld [vmem:[%s784_s5 + $0x38] sm:$0xff]  ;;  %v268_v16 = vld [vmem:[%s784_s5 + $0xc0] sm:$0xff]  ;;  %v269_v17 = vld [vmem:[%s784_s5 + $0xc8] sm:$0xff] }
  0x25   :  { %437 = vmatprep.subr.bf16.mxu1 %v436_v35  ;;  %v466_v18 = vpack.c.bf16 %v251_v15, %v250_v14  ;;  %v468_v19 = vpack.c.bf16 %v269_v17, %v268_v16  ;;  %v252_v20 = vld [vmem:[%s784_s5 + $0x40] sm:$0xff]  ;;  %v253_v21 = vld [vmem:[%s784_s5 + $0x48] sm:$0xff]  ;;  %v270_v22 = vld [vmem:[%s784_s5 + $0xd0] sm:$0xff] }
  0x26   :  { %v271_v23 = vld [vmem:[%s784_s5 + $0xd8] sm:$0xff]  ;;  %v470_v24 = vpack.c.bf16 %v253_v21, %v252_v20  ;;  %v254_v26 = vld [vmem:[%s784_s5 + $0x50] sm:$0xff]  ;;  %v272_v28 = vld [vmem:[%s784_s5 + $0xe0] sm:$0xff] }
  0x27   :  { %459 = vmatpush3.bf16.msra.mxu0 %v458_v6  ;;  %v472_v25 = vpack.c.bf16 %v271_v23, %v270_v22  ;;  %v255_v27 = vld [vmem:[%s784_s5 + $0x58] sm:$0xff]  ;;  %v273_v29 = vld [vmem:[%s784_s5 + $0xe8] sm:$0xff]  ;;  %v360_v32 = vld [vmem:[%s781_s2] ss:$0 sm:$0xff] }
  0x28   :  { %439 = vmatpush1.bf16.msra.mxu1 %v438_v40  ;;  %461 = vmatprep.subr.bf16.mxu0 %v460_v7  ;;  %v474_v30 = vpack.c.bf16 %v255_v27, %v254_v26  ;;  %v476_v31 = vpack.c.bf16 %v273_v29, %v272_v28  ;;  %v256_v37 = vld [vmem:[%s784_s5 + $0x60] sm:$0xff]  ;;  %v257_v38 = vld [vmem:[%s784_s5 + $0x68] sm:$0xff]  ;;  %v274_v40 = vld [vmem:[%s784_s5 + $0xf0] sm:$0xff] }
  0x29   :  { %441 = vmatprep.subr.bf16.mxu1 %v440_v41  ;;  %v478_v39 = vpack.c.bf16 %v257_v38, %v256_v37  ;;  %v275_v41 = vld [vmem:[%s784_s5 + $0xf8] sm:$0xff]  ;;  %v258_v43 = vld [vmem:[%s784_s5 + $0x70] sm:$0xff]  ;;  %v159_v49 = vld [vmem:[%s783_s4] sm:$0x3] }
  0x2a   :  { %v480_v42 = vpack.c.bf16 %v275_v41, %v274_v40  ;;  %v259_v44 = vld [vmem:[%s784_s5 + $0x78] sm:$0xff]  ;;  %v362_v60 = vld [vmem:[%s785_s6] ss:$0 sm:$0xff] }
  0x2b   :  { %463 = vmatpush3.bf16.msra.mxu0 %v462_v12  ;;  %v482_v45 = vpack.c.bf16 %v259_v44, %v258_v43 }
  0x2c   :  { %443 = vmatpush1.bf16.msra.mxu1 %v442_v46  ;;  %465 = vmatprep.subr.bf16.mxu0 %v464_v13  ;;  %v161_v46 = vlaneseq }
  0x2d   :  { %445 = vmatprep.subr.bf16.mxu1 %v444_v47 }
  0x2e   :  { %v162_v47 = vshrl.u32 %v161_v46, 7 }
  0x2f   :  { %467 = vmatpush3.bf16.msra.mxu0 %v466_v18 }
  0x30   :  { %447 = vmatpush1.bf16.msra.mxu1 %v446_v50  ;;  %469 = vmatprep.subr.bf16.mxu0 %v468_v19  ;;  %v163_v48 = vsub.s32 0, %v162_v47  ;;  %v167_v50 = vsub.s32 1, %v162_v47 }
  0x31   :  { %449 = vmatprep.subr.bf16.mxu1 %v448_v53 }
  0x32   :  { %v164_v51 = vrot.slane %v159_v49, %v163_v48  ;;  %v168_v52 = vrot.slane %v159_v49, %v167_v50 }
  0x33   :  { %471 = vmatpush3.bf16.msra.mxu0 %v470_v24 }
  0x34   :  { %451 = vmatpush1.bf16.msra.mxu1 %v450_v56  ;;  %473 = vmatprep.subr.bf16.mxu0 %v472_v25 }
  0x37   :  { %475 = vmatpush3.bf16.msra.mxu0 %v474_v30 }
  0x38   :  { %477 = vmatprep.subr.bf16.mxu0 %v476_v31 }
  0x3b   :  { %479 = vmatpush3.bf16.msra.mxu0 %v478_v39 }
  0x3c   :  { %481 = vmatprep.subr.bf16.mxu0 %v480_v42 }
  0x3f   :  { %483 = vmatpush3.bf16.msra.mxu0 %v482_v45 }
  0xf0   :  { %v122_v33 = vpop.f32.mrb[0].mxu0 }
  0xf1   :  { %v123_v34 = vadd.f32 %v360_v32, %v122_v33  ;;  %v413_v35 = vpop.f32.mrb[1].mxu0 }
  0xf3   :  { %v126_v36 = vmax.f32 %v123_v34, 0.0 }
  0xf5   :  { %236 = vmatmul.mubr.f32.vlgmr.msra.gmra.mrb[0].mxu1 %v126_v36 }
 0x1c8   :  { %v237_v53 = vpop.f32.mrb[0].mxu1 }
 0x1c9   :  { %v238_v54 = vadd.f32 %v237_v53, %v164_v51  ;;  %v239_v55 = vpop.f32.mrb[1].mxu1 }
 0x1ca   :  { %v240_v56 = vadd.f32 %v239_v55, %v168_v52 }
 0x1cb   :  { %v242_v58 = vmax.f32 %v238_v54, 0.0 }
 0x1cc   :  { %v243_v57 = vmax.f32 %v240_v56, 0.0 }
 0x1ce   :  { %347 = vmatprep.mubr.f32.mxu0 %v243_v57 }
 0x1cf   :  { %348 = vmatmul.mubr.f32.vlgmr.msra.gmra.mrb[2].mxu0 %v242_v58 }
 0x2a2   :  { %v400_v59 = vpop.f32.mrb[2].mxu0 }
 0x2a3   :  { %v401_v61 = vpop.f32.mrb[3].mxu0 }
 0x2a4   :  { %v402_v62 = vadd.f32 %v401_v61, %v400_v59 }
 0x2a6   :  { %v350_v63 = vadd.f32 %v402_v62, %v362_v60 }
 0x2a8   :  { %354 = vst.msk [vmem:[%s786_s7] sm:$0xff] %vm353_vm2, %v350_v63 }
 0x2a9   :  { %359 = vsyncpa [#allocation3], 1 }

</bundles_post_ra>
